<compile_context>
chip_gen: v7x
topology: tpu7x:2x2x1
jax: 0.10.0
libtpu: 0.0.40
codegen_flags: <defaults>
</compile_context>

<pallas_src>
import functools
import math

import jax
import jax.numpy as jnp
from jax.experimental import pallas as pl
from jax.experimental.pallas import tpu as pltpu


def _round_up(x, m):
    return ((x + m - 1) // m) * m


# ----------------------------------------------------------------------------
# Kernels
# ----------------------------------------------------------------------------
def _down_proj_kernel(x_ref, a_ref, o_ref, *, apply_act, compute_dtype):
    # Whole K resident: single fused matmul + SiLU per (M-tile) grid step.
    x = x_ref[...]
    a = a_ref[...]
    if compute_dtype is not None:
        x = x.astype(compute_dtype)
        a = a.astype(compute_dtype)
    acc = jnp.dot(x, a, preferred_element_type=jnp.float32)
    if apply_act:
        acc = acc * jax.nn.sigmoid(acc)  # SiLU (EUP sigmoid + VPU mul, free under DMA)
    o_ref[...] = acc.astype(o_ref.dtype)


def _down_proj_kernel_ktiled(x_ref, a_ref, o_ref, acc_ref, *, apply_act, compute_dtype):
    # K split across the last ("arbitrary") grid axis; f32 accumulator scratch.
    k = pl.program_id(1)

    @pl.when(k == 0)
    def _():
        acc_ref[...] = jnp.zeros_like(acc_ref)

    x = x_ref[...]
    a = a_ref[...]
    if compute_dtype is not None:
        x = x.astype(compute_dtype)
        a = a.astype(compute_dtype)
    acc_ref[...] += jnp.dot(x, a, preferred_element_type=jnp.float32)

    @pl.when(k == pl.num_programs(1) - 1)
    def _():
        acc = acc_ref[...]
        if apply_act:
            acc = acc * jax.nn.sigmoid(acc)
        o_ref[...] = acc.astype(o_ref.dtype)


# ----------------------------------------------------------------------------
# Tiling
# ----------------------------------------------------------------------------
def _pick_tiles(M, K, R_pad, x_isz, a_isz, o_isz, tm_req, sublane, budget):
    """Choose (tm, tk, kt): row tile, K tile, number of K grid steps."""
    # Row tile: as large as requested, but keep >= 2 grid steps along M so the
    # "parallel" axis spans both TensorCores on v7x (harmless on 1-TC chips).
    if M <= sublane:
        tm = M  # block dim equal to full array dim is always legal
    else:
        tm = max(sublane, min(_round_up(tm_req, sublane), _round_up(M, sublane)))
        if pl.cdiv(M, tm) < 2:
            tm = max(sublane, _round_up(pl.cdiv(M, 2), sublane))

    def need(tm_, tk_, a_bufs, with_acc):
        return (2 * tm_ * tk_ * x_isz            # double-buffered x tiles
                + a_bufs * tk_ * R_pad * a_isz   # cola_a tile(s)
                + 2 * tm_ * R_pad * o_isz        # double-buffered out tiles
                + (tm_ * R_pad * 4 if with_acc else 0))

    # Preferred: whole K resident (no reduction axis, cola_a single-buffered).
    if need(tm, K, 1, False) <= budget:
        return tm, K, 1

    # Next: keep the large row tile and split K into lane-aligned tiles that
    # divide K exactly (a ragged K block would feed garbage into the MXU).
    best_tk = None
    t = 128
    while t < K:
        if K % t == 0 and need(tm, t, 2, True) <= budget:
            best_tk = t
        t += 128
    if best_tk is not None:
        return tm, best_tk, K // best_tk

    # Last resort: shrink the row tile with full K resident.
    while tm > sublane and need(tm, K, 1, False) > budget:
        tm = max(sublane, _round_up(tm // 2, sublane))
    return tm, K, 1


# ----------------------------------------------------------------------------
# Wrapper
# ----------------------------------------------------------------------------
def cola_m_down_proj(x, cola_a, *, tm=None, lr_act=True, compute_dtype=None):
    """Pallas implementation of ColaMDownProjLayer.forward.

    x:             (..., in_features)
    cola_a:        (in_features, rank)
    tm:            optional row-tile size; default 1024 on v5e/v6e, 512 on v7x.
    compute_dtype: optional dtype (e.g. jnp.bfloat16) for the matmul operands.
                   The cast happens on the tile *inside* the kernel (MXU-only
                   win); for a real HBM saving, feed bf16 x from the producer.
    returns        (..., rank), dtype of x.
    """
    orig_shape = x.shape
    out_dtype = x.dtype
    K = orig_shape[-1]
    assert cola_a.shape[0] == K, (cola_a.shape, K)
    R = cola_a.shape[1]
    M = math.prod(orig_shape[:-1]) if len(orig_shape) > 1 else 1

    x2 = x.reshape(M, K)

    # Lane-dense output stores (unmasked vst); padding sliced off afterwards.
    # TODO(synk): for small K (<~1k) and rank << 128 the padded writeback can be
    # 10-20% of HBM traffic; benchmark an unpadded (tm, R) output block there.
    R_pad = _round_up(R, 128)
    a_p = cola_a if R_pad == R else jnp.pad(cola_a, ((0, 0), (0, R_pad - R)))

    # --- per-generation VMEM budget / defaults -------------------------------
    try:
        vmem_cap = int(pltpu.get_tpu_info().vmem_capacity_bytes)
    except Exception:
        vmem_cap = 64 << 20  # conservative (v7x-sized) if the query is unavailable
    vmem_budget = vmem_cap - max(4 << 20, vmem_cap // 8)  # ~56 MiB v7x, ~112 MiB v5e/v6e
    if tm is None:
        tm = 1024 if vmem_cap >= (100 << 20) else 512

    x_isz = x2.dtype.itemsize
    a_isz = a_p.dtype.itemsize
    o_isz = jnp.dtype(out_dtype).itemsize
    sublane = {4: 8, 2: 16, 1: 32}.get(x_isz, 8)

    tm_eff, tk, kt = _pick_tiles(M, K, R_pad, x_isz, a_isz, o_isz, tm, sublane, vmem_budget)
    mt = pl.cdiv(M, tm_eff)  # non-divisible grid: Pallas masks the ragged last block

    a_bufs = 1 if kt == 1 else 2
    vmem_need = (2 * tm_eff * tk * x_isz
                 + a_bufs * tk * R_pad * a_isz
                 + 2 * tm_eff * R_pad * o_isz
                 + (tm_eff * R_pad * 4 if kt > 1 else 0))
    vmem_limit = int(min(vmem_budget, max(32 << 20, vmem_need + (8 << 20))))

    def build(a_single_buffer):
        if a_single_buffer:
            a_spec = pl.BlockSpec((tk, R_pad), lambda i, k: (k, 0),
                                  pipeline_mode=pl.Buffered(1))
        else:
            a_spec = pl.BlockSpec((tk, R_pad), lambda i, k: (k, 0))
        if kt > 1:
            kernel = functools.partial(_down_proj_kernel_ktiled,
                                       apply_act=lr_act, compute_dtype=compute_dtype)
            scratch = [pltpu.VMEM((tm_eff, R_pad), jnp.float32)]
        else:
            kernel = functools.partial(_down_proj_kernel,
                                       apply_act=lr_act, compute_dtype=compute_dtype)
            scratch = []
        return pl.pallas_call(
            kernel,
            out_shape=jax.ShapeDtypeStruct((M, R_pad), out_dtype),
            grid_spec=pltpu.PrefetchScalarGridSpec(
                num_scalar_prefetch=0,
                grid=(mt, kt),
                in_specs=[pl.BlockSpec((tm_eff, tk), lambda i, k: (i, k)),  # x row tile
                          a_spec],                                          # cola_a tile
                out_specs=pl.BlockSpec((tm_eff, R_pad), lambda i, k: (i, 0)),
                scratch_shapes=scratch,
            ),
            compiler_params=pltpu.CompilerParams(
                dimension_semantics=("parallel", "arbitrary"),
                vmem_limit_bytes=vmem_limit,
            ),
        )

    if kt == 1:
        # cola_a has a constant index_map: single-buffer it; fall back to the
        # default double buffer if pl.Buffered(1) is unsupported on this jax.
        try:
            out = build(True)(x2, a_p)
        except Exception:
            out = build(False)(x2, a_p)
    else:
        out = build(False)(x2, a_p)

    if R_pad != R:
        out = out[:, :R]
    return out.reshape(*orig_shape[:-1], R)


# ----------------------------------------------------------------------------
# Parameter init (matches the PyTorch module) and pure-JAX reference
# ----------------------------------------------------------------------------
def init_cola_a(key, in_features, out_features, rank, dtype=jnp.float32):
    # torch.randn(in_features, rank) / rank**(1/4) * target_sdv**(1/2)
    target_sdv = (in_features + out_features) ** (-0.5)
    a = jax.random.normal(key, (in_features, rank), dtype=dtype)
    return a / (rank ** 0.25) * (target_sdv ** 0.5)


def _reference(x, cola_a):
    out = jnp.matmul(x, cola_a)
    return out * jax.nn.sigmoid(out)  # silu


if __name__ == "__main__":
    # Small deterministic shapes: batch=2, seq=8, in_features=32,
    # out_features=32 (only used for the init scale), rank=8.
    batch, seq = 2, 8
    in_features, out_features, rank = 32, 32, 8

    key = jax.random.PRNGKey(0)
    kx, ka, kx2 = jax.random.split(key, 3)

    x = jax.random.normal(kx, (batch, seq, in_features), dtype=jnp.float32)
    cola_a = init_cola_a(ka, in_features, out_features, rank)

    y = jax.block_until_ready(cola_m_down_proj(x, cola_a))
    y_ref = _reference(x, cola_a)
    assert y.shape == (batch, seq, rank), y.shape
    assert jnp.allclose(y, y_ref, atol=1e-5, rtol=1e-5), "mismatch vs reference"

    # Non-divisible M (3*5 = 15 rows) exercises the ragged-last-block path.
    x_odd = jax.random.normal(kx2, (3, 5, in_features), dtype=jnp.float32)
    y_odd = jax.block_until_ready(cola_m_down_proj(x_odd, cola_a))
    y_odd_ref = _reference(x_odd, cola_a)
    assert y_odd.shape == (3, 5, rank), y_odd.shape
    assert jnp.allclose(y_odd, y_odd_ref, atol=1e-5, rtol=1e-5), "mismatch (odd M)"

    print("KERNEL_OK")
</pallas_src>

<mosaic_0001>
module attributes {stable_mosaic.version = 11 : i64} {
  func.func @_down_proj_kernel(%arg0: i32, %arg1: i32, %arg2: memref<8x32xf32, #tpu.memory_space<vmem>>, %arg3: memref<32x128xf32, #tpu.memory_space<vmem>>, %arg4: memref<8x128xf32, #tpu.memory_space<vmem>>) attributes {dimension_semantics = [#tpu.dimension_semantics<parallel>, #tpu.dimension_semantics<arbitrary>], iteration_bounds = array<i64: 2, 1>, scalar_prefetch = 0 : i64, scratch_operands = 0 : i64, tpu.core_type = #tpu.core_type<tc>, window_params = [{transform_indices = @transform_0, window_bounds = array<i64: 8, 32>}, {pipeline_mode = #tpu.pipeline_mode<synchronous>, transform_indices = @transform_1, window_bounds = array<i64: 32, 128>}, {transform_indices = @transform_2, window_bounds = array<i64: 8, 128>}]} {
    %c0 = arith.constant 0 : index
    %c0_0 = arith.constant 0 : index
    %0 = vector.load %arg2[%c0, %c0_0] : memref<8x32xf32, #tpu.memory_space<vmem>>, vector<8x32xf32>
    %c0_1 = arith.constant 0 : index
    %c0_2 = arith.constant 0 : index
    %1 = vector.load %arg3[%c0_1, %c0_2] : memref<32x128xf32, #tpu.memory_space<vmem>>, vector<32x128xf32>
    %cst = arith.constant dense<0.000000e+00> : vector<8x128xf32>
    %2 = tpu.matmul %0, %1, %cst {dimension_numbers = #tpu.dot_dimension_numbers<[1], [0], [0], [1], [0, 0, 1, 1], [], []>} : vector<8x32xf32>, vector<32x128xf32>, vector<8x128xf32> -> vector<8x128xf32>
    %3 = arith.negf %2 : vector<8x128xf32>
    %4 = math.exp %3 : vector<8x128xf32>
    %cst_3 = arith.constant 1.000000e+00 : f32
    %5 = vector.broadcast %cst_3 : f32 to vector<8x128xf32>
    %6 = arith.addf %5, %4 : vector<8x128xf32>
    %7 = arith.divf %5, %6 : vector<8x128xf32>
    %8 = arith.mulf %2, %7 : vector<8x128xf32>
    %c0_4 = arith.constant 0 : index
    %c0_5 = arith.constant 0 : index
    %9 = vector.load %arg4[%c0_4, %c0_5] : memref<8x128xf32, #tpu.memory_space<vmem>>, vector<8x128xf32>
    tpu.vector_store %arg4[%c0_4, %c0_5], %8 {strides = array<i32>} : memref<8x128xf32, #tpu.memory_space<vmem>>, vector<8x128xf32>,
    return
  }
  func.func @transform_0(%arg0: i32, %arg1: i32) -> (i32, i32) {
    %c0_i32 = arith.constant 0 : i32
    return %arg0, %arg1 : i32, i32
  }
  func.func @transform_1(%arg0: i32, %arg1: i32) -> (i32, i32) {
    %c0_i32 = arith.constant 0 : i32
    %c0_i32_0 = arith.constant 0 : i32
    return %arg1, %c0_i32 : i32, i32
  }
  func.func @transform_2(%arg0: i32, %arg1: i32) -> (i32, i32) {
    %c0_i32 = arith.constant 0 : i32
    %c0_i32_0 = arith.constant 0 : i32
    return %arg0, %c0_i32 : i32, i32
  }
}

module attributes {stable_mosaic.version = 11 : i64} {
  func.func @_down_proj_kernel(%arg0: i32, %arg1: i32, %arg2: memref<8x32xf32, #tpu.memory_space<vmem>>, %arg3: memref<32x128xf32, #tpu.memory_space<vmem>>, %arg4: memref<8x128xf32, #tpu.memory_space<vmem>>) attributes {dimension_semantics = [#tpu.dimension_semantics<parallel>, #tpu.dimension_semantics<arbitrary>], iteration_bounds = array<i64: 2, 1>, scalar_prefetch = 0 : i64, scratch_operands = 0 : i64, tpu.core_type = #tpu.core_type<tc>, window_params = [{transform_indices = @transform_0, window_bounds = array<i64: 8, 32>}, {transform_indices = @transform_1, window_bounds = array<i64: 32, 128>}, {transform_indices = @transform_2, window_bounds = array<i64: 8, 128>}]} {
    %c0 = arith.constant 0 : index
    %c0_0 = arith.constant 0 : index
    %0 = vector.load %arg2[%c0, %c0_0] : memref<8x32xf32, #tpu.memory_space<vmem>>, vector<8x32xf32>
    %c0_1 = arith.constant 0 : index
    %c0_2 = arith.constant 0 : index
    %1 = vector.load %arg3[%c0_1, %c0_2] : memref<32x128xf32, #tpu.memory_space<vmem>>, vector<32x128xf32>
    %cst = arith.constant dense<0.000000e+00> : vector<8x128xf32>
    %2 = tpu.matmul %0, %1, %cst {dimension_numbers = #tpu.dot_dimension_numbers<[1], [0], [0], [1], [0, 0, 1, 1], [], []>} : vector<8x32xf32>, vector<32x128xf32>, vector<8x128xf32> -> vector<8x128xf32>
    %3 = arith.negf %2 : vector<8x128xf32>
    %4 = math.exp %3 : vector<8x128xf32>
    %cst_3 = arith.constant 1.000000e+00 : f32
    %5 = vector.broadcast %cst_3 : f32 to vector<8x128xf32>
    %6 = arith.addf %5, %4 : vector<8x128xf32>
    %7 = arith.divf %5, %6 : vector<8x128xf32>
    %8 = arith.mulf %2, %7 : vector<8x128xf32>
    %c0_4 = arith.constant 0 : index
    %c0_5 = arith.constant 0 : index
    %9 = vector.load %arg4[%c0_4, %c0_5] : memref<8x128xf32, #tpu.memory_space<vmem>>, vector<8x128xf32>
    tpu.vector_store %arg4[%c0_4, %c0_5], %8 {strides = array<i32>} : memref<8x128xf32, #tpu.memory_space<vmem>>, vector<8x128xf32>,
    return
  }
  func.func @transform_0(%arg0: i32, %arg1: i32) -> (i32, i32) {
    %c0_i32 = arith.constant 0 : i32
    return %arg0, %arg1 : i32, i32
  }
  func.func @transform_1(%arg0: i32, %arg1: i32) -> (i32, i32) {
    %c0_i32 = arith.constant 0 : i32
    %c0_i32_0 = arith.constant 0 : i32
    return %arg1, %c0_i32 : i32, i32
  }
  func.func @transform_2(%arg0: i32, %arg1: i32) -> (i32, i32) {
    %c0_i32 = arith.constant 0 : i32
    %c0_i32_0 = arith.constant 0 : i32
    return %arg0, %c0_i32 : i32, i32
  }
}

</mosaic_0001>

<bundles_post_ra>
// kernel: tpu_custom_call.1
= control target key start
LH: loop header
LB: loop body
LE: loop exit
PB: predicated region body
PF: predicated region fallthrough
CT: control target
= control target key end

     0   :  { %7 = vsyncpa [#allocation3], 0  ;;  %s898_s0 = inlined_call_operand.hbm [shape: f32[16,32], index: 0, kind: input, shape index: {}]   ;;  %s899_s1 = inlined_call_operand.hbm [shape: f32[32,128], index: 1, kind: input, shape index: {}]   ;;  %s900_s2 = inlined_call_operand.hbm [shape: f32[16,128], index: 2, kind: output, shape index: {}]  }
   0x1   :  { %9 = vsyncpa [#allocation3 + $0x1], 0 }
   0x2   :  { %10 = vsyncpa [#allocation6], 0 }
   0x3   :  { %11 = vsyncpa [#allocation4], 0 }
   0x4   :  { %13 = vsyncpa [#allocation4 + $0x1], 0  ;;  %s680_s9 = smov 0   ;;  %s682_s10 = smov 0  }
   0x5   :  { %s684_s11 = smov 0   ;;  %s686_s12 = smov 0  }
   0x6   :  { %s688_s13 = smov 0   ;;  %s690_s14 = smov 0  }
   0x7 LB: > { %s390_s15 = sadd.s32 4294967295, %s655_s14   ;;  %s391_s16 = sadd.s32 4294967294, %s655_s14   ;;  %s655_s14 = sphi %s690_s14, %s19_s14   ;;  %s651_s13 = sphi %s688_s13, %s924_s13   ;;  %s647_s12 = sphi %s686_s12, %s923_s12   ;;  %s643_s11 = sphi %s684_s11, %s922_s11   ;;  %s639_s10 = sphi %s682_s10, %s921_s10   ;;  %s635_s9 = sphi %s680_s9, %s920_s9  }
   0x8   : > { %p53_p0 = scmp.ne.s32.totalorder %s639_s10, %s635_s9  ;;  %p714_p1 = scmp.eq.s32.totalorder %s390_s15, 0 }
   0x9   : > { %p718_p2 = scmp.eq.s32.totalorder %s390_s15, 1  ;;  %p109_p3 = scmp.eq.s32.totalorder %s391_s16, 1 }
   0xa   : > { %s905_s17 = scalar_select %p714_p1, 1, 0 }
   0xb   : > { %s906_s18 = scalar_select %p718_p2, 1, 0 }
   0xc   : > { %p724_p4 = por %p714_p1, %p53_p0  ;;  %p392_p5 = scmp.ge.s32.totalorder %s655_s14, 1 }
   0xd   : > { %p729_p6 = por %p109_p3, %p53_p0  ;;  %p116_p7 = scmp.lt.s32.totalorder %s655_s14, 3 }
   0xe   : > { %s907_s19 = scalar_select %p724_p4, 1, 0 }
   0xf   : > { %s908_s20 = scalar_select %p729_p6, 1, 0 }
  0x10   : > { %p734_p8 = pnand %p392_p5, %p116_p7  ;;  %s657_s22 = smov [#allocation5]  }
  0x11   : > { %s131_s23 = sshll.u32 %s657_s22, 4  ;;  %s31_s25 = sadd.s32 1, %s651_s13  ;;  %s132_s23 = int_to_ptr.vmem [resolvable:$true] %s131_s23 }
  0x12   : > { %s909_s21 = scalar_select %p734_p8, 1, 0 }
  0x13   : > { %p437_p9 = pneg %p734_p8  ;;  %s511_s28 = scalar_lea.hbm %s899_s1, 512 }
  0x14   : > { %p512_p12 = scmp.ne.s32.totalorder %s899_s1, %s511_s28  ;;  %p518_p5 = scmp.lt.u32.totalorder %s511_s28, %s899_s1 }
  0x15   : > { %p743_p11 = pnand %p437_p9, %p714_p1 }
  0x17   : > { %p513_p13 = pneg %p743_p11 }
  0x19   : > { %p514_p0 = pnand %p513_p13, %p512_p12 }
  0x1b   : > { %p515_p3 = pneg %p514_p0 }
  0x1d   : > { %p520_p7 = pnand %p518_p5, %p515_p3 }
  0x1f   : > { %523 = shalt.err (!%p520_p7)
}
  0x20   : > { %s524_s5 = scalar_lea.vmem %s132_s23, 512  ;;  %p532_p1 = scmp.lt.s32.totalorder %s132_s23, %s132_s23 }
  0x21   : > { %p525_p9 = scmp.ne.s32.totalorder %s132_s23, %s524_s5  ;;  %p533_p4 = scmp.lt.s32.totalorder %s524_s5, %s524_s5 }
  0x23   : > { %p527_p10 = pnand %p525_p9, %p513_p13  ;;  %p534_p8 = por %p533_p4, %p532_p1 }
  0x25   : > { %p528_p6 = pneg %p527_p10 }
  0x27   : > { %p535_p2 = pnand %p534_p8, %p528_p6 }
  0x29   : > { %538 = shalt.err (!%p535_p2)
}
  0x2a   : > { %s658_s6 = smov 128   ;;  %s659_s7 = smov 8  }
  0x2b   : > { %440 = dma.hbm_to_vmem [thread:$0]  (!%p743_p11), %s899_s1, 512, %s132_s23, [#allocation6], %s658_s6, %s658_s6, %s659_s7  }
  0x2c   : > { %p33_p1 = scmp.ge.s32.totalorder %s31_s25, 2  ;;  %s40_s16 = sadd.s32 1, %s643_s11 }
  0x2d   : > { %p47_p2 = scmp.ne.s32.totalorder %s643_s11, %s639_s10  ;;  %p48_p4 = scmp.eq.s32.totalorder %s655_s14, 0 }
  0x2e   : > { %s926_s25 = smov (%p33_p1, %s31_s25), 0  ;;  %p912_p8 = scmp.ne.s32.totalorder %s906_s18, 0 }
  0x2f   : > { %p770_p6 = por %p48_p4, %p47_p2  ;;  %s35_s24 = ssub.s32 %s651_s13, %s926_s25 }
  0x30   : > { %p776_p10 = por %p912_p8, %p47_p2  ;;  %p450_p12 = scmp.lt.s32.totalorder %s655_s14, 2 }
  0x31   : > { %p38_p11 = scmp.eq.s32.totalorder %s35_s24, 0  ;;  %s145_s23 = sand.u32 1, %s643_s11  }
  0x32   : > { %s395_s27 = sshll.u32 %s145_s23, 3  ;;  %s396_s29 = sshll.u32 %s651_s13, 7 }
  0x33   : > { %s785_s28 = scalar_select %p38_p11, %s643_s11, %s40_s16  }
  0x34   : > { %s791_s4 = scalar_lea.hbm %s898_s0, %s396_s29  ;;  %s149_s18 = scalar_lea.vmem [#allocation2], %s395_s27 }
  0x35   : > { %s157_s5 = sshll.u32 %s149_s18, 4  ;;  %p797_p13 = pnand %p450_p12, %p770_p6  ;;  %s793_s5 = int_to_ptr.vmem [resolvable:$true] %s157_s5 }
  0x36   : > { %s146_s7 = scalar_lea.sflag [#allocation3], %s145_s23  ;;  %s539_s8 = scalar_lea.hbm %s791_s4, 128 }
  0x37   : > { %p540_p0 = scmp.ne.s32.totalorder %s791_s4, %s539_s8  ;;  %p541_p3 = pneg %p797_p13 }
  0x38   : > { %s544_s24 = scalar_lea.hbm %s898_s0, 256  ;;  %p545_p9 = scmp.lt.u32.totalorder %s791_s4, %s898_s0 }
  0x39   : > { %p542_p5 = pnand %p541_p3, %p540_p0  ;;  %p546_p1 = scmp.lt.u32.totalorder %s544_s24, %s539_s8 }
  0x3a   : > { %p548_p4 = scmp.lt.u32.totalorder %s539_s8, %s791_s4 }
  0x3b   : > { %p543_p7 = pneg %p542_p5  ;;  %p547_p2 = por %p546_p1, %p545_p9 }
  0x3d   : > { %p549_p6 = por %p548_p4, %p547_p2 }
  0x3f   : > { %p550_p8 = pnand %p549_p6, %p543_p7 }
  0x41   : > { %553 = shalt.err (!%p550_p8)
}
  0x42   : > { %s554_s23 = scalar_lea.vmem %s793_s5, 128  ;;  %s660_s29 = smov [#allocation2]  }
  0x43   : > { %p555_p12 = scmp.ne.s32.totalorder %s793_s5, %s554_s23  ;;  %s559_s30 = sshll.u32 %s660_s29, 4  ;;  %s560_s30 = int_to_ptr.vmem [resolvable:$false] %s559_s30 }
  0x44   : > { %s561_s3 = scalar_lea.vmem %s560_s30, 256  ;;  %p562_p5 = scmp.lt.s32.totalorder %s793_s5, %s560_s30 }
  0x45   : > { %p557_p11 = pnand %p555_p12, %p541_p3  ;;  %p563_p9 = scmp.lt.s32.totalorder %s561_s3, %s554_s23 }
  0x47   : > { %p558_p0 = pneg %p557_p11  ;;  %p564_p1 = por %p563_p9, %p562_p5 }
  0x49   : > { %p565_p2 = pnand %p564_p1, %p558_p0 }
  0x4b   : > { %568 = shalt.err (!%p565_p2)
}
  0x4c   : > { %444 = dma.hbm_to_vmem [thread:$0]  (!%p797_p13), %s791_s4, 128, %s793_s5, %s146_s7  }
  0x4d   : > { %p915_p7 = scmp.ne.s32.totalorder %s909_s21, 0 }
  0x4e   : > { %s829_s18 = sand.u32 (!%p915_p7), 1, %s639_s10   ;;  %p916_p3 = scmp.ne.s32.totalorder (!%p915_p7), %s907_s19, 0 }
  0x4f   : > { %166 = sbr.rel (%p915_p7) target bundleno = 355 (0x163), region = 28  ;;  %s398_s8 = sshll.u32 (!%p915_p7), %s829_s18, 3 }
  0x50   : > { %s169_s15 = scalar_lea.sflag (!%p915_p7), [#allocation3], %s829_s18  ;;  %s172_s16 = scalar_lea.vmem (!%p915_p7), [#allocation2], %s398_s8 }
  0x56   : > { %622 = dma.done.wait (%p916_p3), %s169_s15, 128  }
  0x57   : > { %624 = vsyncadd (%p916_p3), %s169_s15, 4294967168  ;;  %p917_p13 = scmp.ne.s32.totalorder %s905_s17, 0 }
  0x59   : > { %626 = dma.done.wait (%p917_p13), [#allocation6], 512  }
  0x5a   : > { %628 = vsyncadd (%p917_p13), [#allocation6], 4294966784  ;;  %v661_v0 = vmov 0.0|0.0   ;;  %vm662_vm0 = vmmov 0   ;;  %v663_v1 = vmov 0.0   ;;  %v199_v2 = vld [vmem:[#allocation5] sm:$0xff] }
  0x5b   : > { %423 = vmatprep.subr.bf16.mxu0 %v661_v0  ;;  %420 = vmatprep.mubr.msk.f32.mxu0 %vm662_vm0, %v663_v1  ;;  %v200_v3 = vld [vmem:[#allocation5 + $0x8] sm:$0xff]  ;;  %v201_v4 = vld [vmem:[#allocation5 + $0x10] sm:$0xff]  ;;  %v202_v6 = vld [vmem:[#allocation5 + $0x18] sm:$0xff]  ;;  %vm203_vm1 = vcmask 261120   ;;  %s404_s17 = sshll.u32 %s647_s12, 7  ;;  %s196_s19 = scalar_lea.vmem [#allocation7], %s398_s8 }
  0x5c   : > { %v424_v5 = vpack.c.bf16 %v200_v3, %v199_v2  ;;  %v427_v7 = vpack.c.bf16 %v202_v6, %v201_v4  ;;  %v198_v8 = vld [vmem:[%s172_s16] sm:$0xff]  ;;  %s299_s21 = sshll.u32 %s196_s19, 4  ;;  %s849_s6 = scalar_lea.hbm %s900_s2, %s404_s17  ;;  %s851_s21 = int_to_ptr.vmem [resolvable:$true] %s299_s21 }
  0x5d   : > { %s286_s7 = scalar_lea.sflag [#allocation4], %s829_s18  ;;  %s569_s24 = scalar_lea.vmem %s851_s21, 128 }
  0x5e   : > { %425 = vmatpush3.bf16.msra.mxu0 %v424_v5  ;;  %p570_p4 = scmp.ne.s32.totalorder %s851_s21, %s569_s24  ;;  %s664_s12 = smov [#allocation7]  }
  0x5f   : > { %426 = vmatprep.subr.bf16.mxu0 %v661_v0  ;;  %s573_s22 = sshll.u32 %s664_s12, 4  ;;  %s574_s22 = int_to_ptr.vmem [resolvable:$false] %s573_s22 }
  0x60   : > { %p571_p6 = pnand %p570_p4, %p776_p10  ;;  %s575_s27 = scalar_lea.vmem %s574_s22, 256 }
  0x61   : > { %p576_p12 = scmp.lt.s32.totalorder %s851_s21, %s574_s22  ;;  %p577_p11 = scmp.lt.s32.totalorder %s575_s27, %s569_s24 }
  0x62   : > { %428 = vmatpush3.bf16.msra.mxu0 %v427_v7  ;;  %p572_p8 = pneg %p571_p6 }
  0x63   : > { %p578_p0 = por %p577_p11, %p576_p12 }
  0x65   : > { %421 = vmatmul.mubr.msk.f32.vlgmr.msra.gmra.mrb[0].mxu0 %vm203_vm1, %v198_v8  ;;  %p579_p5 = pnand %p578_p0, %p572_p8 }
 0x138   : > { %v273_v9 = vpop.f32.mrb[0].mxu0 }
 0x139   : > { %v402_v10 = vmul.f32 -1.442695, %v273_v9  ;;  %v422_v11 = vpop.f32.mrb[1].mxu0 }
 0x13b   : > { %507 = vpow2.f32 %v402_v10 }
 0x145   : > { %v508_v12 = vpop.eup %507 }
 0x146   : > { %v280_v13 = vadd.f32 1.0, %v508_v12 }
 0x148   : > { %509 = vrcp.f32 %v280_v13 }
 0x152   : > { %v510_v14 = vpop.eup %509 }
 0x153   : > { %v283_v15 = vmul.f32 %v510_v14, %v273_v9 }
 0x155   : > { %284 = vst [vmem:[%s196_s19] sm:$0xff] %v283_v15 }
 0x156   : > { %582 = shalt.err (!%p579_p5)
}
 0x157   : > { %s583_s23 = scalar_lea.hbm %s849_s6, 128  ;;  %s587_s3 = scalar_lea.hbm %s900_s2, 256 }
 0x158   : > { %p584_p9 = scmp.ne.s32.totalorder %s849_s6, %s583_s23  ;;  %p588_p7 = scmp.lt.u32.totalorder %s849_s6, %s900_s2 }
 0x159   : > { %p589_p3 = scmp.lt.u32.totalorder %s587_s3, %s583_s23  ;;  %p591_p4 = scmp.lt.u32.totalorder %s583_s23, %s849_s6 }
 0x15a   : > { %p585_p1 = pnand %p584_p9, %p776_p10 }
 0x15b   : > { %p590_p13 = por %p589_p3, %p588_p7 }
 0x15c   : > { %p586_p2 = pneg %p585_p1 }
 0x15d   : > { %p592_p6 = por %p591_p4, %p590_p13 }
 0x15f   : > { %p593_p8 = pnand %p592_p6, %p586_p2 }
 0x161   : > { %596 = shalt.err (!%p593_p8)
}
 0x162   : > { %435 = dma.vmem_to_hbm [thread:$0]  (%p776_p10), %s851_s21, 128, %s849_s6, %s286_s7  }
 0x163 PF: > { %s311_s15 = sand.u32 1, %s635_s9   ;;  %p918_p12 = scmp.ne.s32.totalorder %s908_s20, 0 }
 0x164   : > { %p919_p11 = scmp.ge.s32.totalorder %s655_s14, 2  ;;  %s312_s16 = scalar_lea.sflag [#allocation4], %s311_s15 }
 0x166   : > { %p446_p0 = pnand %p919_p11, %p918_p12 }
 0x168   : > { %630 = dma.done.wait (!%p446_p0), %s312_s16, 128  }
 0x169   : > { %632 = vsyncadd (!%p446_p0), %s312_s16, 4294967168  ;;  %s19_s14 = sadd.s32 1, %s655_s14   ;;  %s920_s9 = smov %s639_s10 }
 0x16a   : > { %p16_p5 = scmp.ge.s32.totalorder %s19_s14, 4   ;;  %s921_s10 = smov %s643_s11 }
 0x16b   : > { %s922_s11 = smov %s785_s28  ;;  %s923_s12 = smov %s651_s13 }
 0x16c   : > { %s924_s13 = smov %s926_s25  ;;  %18 = sbr.rel (!%p16_p5) target bundleno = 7 (0x7), region = 78 }
 0x173   :  { %317 = vsyncpa [#allocation3], 1 }
 0x174   :  { %319 = vsyncpa [#allocation3 + $0x1], 1 }
 0x175   :  { %320 = vsyncpa [#allocation6], 1 }
 0x176   :  { %321 = vsyncpa [#allocation4], 1 }
 0x177   :  { %323 = vsyncpa [#allocation4 + $0x1], 1 }

// kernel: tpu_custom_call.1
= control target key start
LH: loop header
LB: loop body
LE: loop exit
PB: predicated region body
PF: predicated region fallthrough
CT: control target
= control target key end

     0   :  { %7 = vsyncpa [#allocation3], 0  ;;  %s898_s0 = inlined_call_operand.hbm [shape: f32[16,32], index: 0, kind: input, shape index: {}]   ;;  %s899_s1 = inlined_call_operand.hbm [shape: f32[32,128], index: 1, kind: input, shape index: {}]   ;;  %s900_s2 = inlined_call_operand.hbm [shape: f32[16,128], index: 2, kind: output, shape index: {}]  }
   0x1   :  { %9 = vsyncpa [#allocation3 + $0x1], 0 }
   0x2   :  { %10 = vsyncpa [#allocation6], 0 }
   0x3   :  { %11 = vsyncpa [#allocation4], 0 }
   0x4   :  { %13 = vsyncpa [#allocation4 + $0x1], 0  ;;  %s680_s9 = smov 0   ;;  %s682_s10 = smov 0  }
   0x5   :  { %s684_s11 = smov 0   ;;  %s686_s12 = smov 0  }
   0x6   :  { %s688_s13 = smov 0   ;;  %s690_s14 = smov 0  }
   0x7 LB: > { %s390_s15 = sadd.s32 4294967295, %s655_s14   ;;  %s391_s16 = sadd.s32 4294967294, %s655_s14   ;;  %s655_s14 = sphi %s690_s14, %s19_s14   ;;  %s651_s13 = sphi %s688_s13, %s924_s13   ;;  %s647_s12 = sphi %s686_s12, %s923_s12   ;;  %s643_s11 = sphi %s684_s11, %s922_s11   ;;  %s639_s10 = sphi %s682_s10, %s921_s10   ;;  %s635_s9 = sphi %s680_s9, %s920_s9  }
   0x8   : > { %p53_p0 = scmp.ne.s32.totalorder %s639_s10, %s635_s9  ;;  %p714_p1 = scmp.eq.s32.totalorder %s390_s15, 0 }
   0x9   : > { %p718_p2 = scmp.eq.s32.totalorder %s390_s15, 1  ;;  %p109_p3 = scmp.eq.s32.totalorder %s391_s16, 1 }
   0xa   : > { %s905_s17 = scalar_select %p714_p1, 1, 0 }
   0xb   : > { %s906_s18 = scalar_select %p718_p2, 1, 0 }
   0xc   : > { %p724_p4 = por %p714_p1, %p53_p0  ;;  %p392_p5 = scmp.ge.s32.totalorder %s655_s14, 1 }
   0xd   : > { %p729_p6 = por %p109_p3, %p53_p0  ;;  %p116_p7 = scmp.lt.s32.totalorder %s655_s14, 3 }
   0xe   : > { %s907_s19 = scalar_select %p724_p4, 1, 0 }
   0xf   : > { %s908_s20 = scalar_select %p729_p6, 1, 0 }
  0x10   : > { %p734_p8 = pnand %p392_p5, %p116_p7  ;;  %s657_s22 = smov [#allocation5]  }
  0x11   : > { %s131_s23 = sshll.u32 %s657_s22, 4  ;;  %s31_s25 = sadd.s32 1, %s651_s13  ;;  %s132_s23 = int_to_ptr.vmem [resolvable:$true] %s131_s23 }
  0x12   : > { %s909_s21 = scalar_select %p734_p8, 1, 0 }
  0x13   : > { %p437_p9 = pneg %p734_p8  ;;  %s511_s28 = scalar_lea.hbm %s899_s1, 512 }
  0x14   : > { %p512_p12 = scmp.ne.s32.totalorder %s899_s1, %s511_s28  ;;  %p518_p5 = scmp.lt.u32.totalorder %s511_s28, %s899_s1 }
  0x15   : > { %p743_p11 = pnand %p437_p9, %p714_p1 }
  0x17   : > { %p513_p13 = pneg %p743_p11 }
  0x19   : > { %p514_p0 = pnand %p513_p13, %p512_p12 }
  0x1b   : > { %p515_p3 = pneg %p514_p0 }
  0x1d   : > { %p520_p7 = pnand %p518_p5, %p515_p3 }
  0x1f   : > { %523 = shalt.err (!%p520_p7)
}
  0x20   : > { %s524_s5 = scalar_lea.vmem %s132_s23, 512  ;;  %p532_p1 = scmp.lt.s32.totalorder %s132_s23, %s132_s23 }
  0x21   : > { %p525_p9 = scmp.ne.s32.totalorder %s132_s23, %s524_s5  ;;  %p533_p4 = scmp.lt.s32.totalorder %s524_s5, %s524_s5 }
  0x23   : > { %p527_p10 = pnand %p525_p9, %p513_p13  ;;  %p534_p8 = por %p533_p4, %p532_p1 }
  0x25   : > { %p528_p6 = pneg %p527_p10 }
  0x27   : > { %p535_p2 = pnand %p534_p8, %p528_p6 }
  0x29   : > { %538 = shalt.err (!%p535_p2)
}
  0x2a   : > { %s658_s6 = smov 128   ;;  %s659_s7 = smov 8  }
  0x2b   : > { %440 = dma.hbm_to_vmem [thread:$0]  (!%p743_p11), %s899_s1, 512, %s132_s23, [#allocation6], %s658_s6, %s658_s6, %s659_s7  }
  0x2c   : > { %p33_p1 = scmp.ge.s32.totalorder %s31_s25, 2  ;;  %s40_s16 = sadd.s32 1, %s643_s11 }
  0x2d   : > { %p47_p2 = scmp.ne.s32.totalorder %s643_s11, %s639_s10  ;;  %p48_p4 = scmp.eq.s32.totalorder %s655_s14, 0 }
  0x2e   : > { %s926_s25 = smov (%p33_p1, %s31_s25), 0  ;;  %p912_p8 = scmp.ne.s32.totalorder %s906_s18, 0 }
  0x2f   : > { %p770_p6 = por %p48_p4, %p47_p2  ;;  %s35_s24 = ssub.s32 %s651_s13, %s926_s25 }
  0x30   : > { %p776_p10 = por %p912_p8, %p47_p2  ;;  %p450_p12 = scmp.lt.s32.totalorder %s655_s14, 2 }
  0x31   : > { %p38_p11 = scmp.eq.s32.totalorder %s35_s24, 0  ;;  %s145_s23 = sand.u32 1, %s643_s11  }
  0x32   : > { %s395_s27 = sshll.u32 %s145_s23, 3  ;;  %s396_s29 = sshll.u32 %s651_s13, 7 }
  0x33   : > { %s785_s28 = scalar_select %p38_p11, %s643_s11, %s40_s16  }
  0x34   : > { %s791_s4 = scalar_lea.hbm %s898_s0, %s396_s29  ;;  %s149_s18 = scalar_lea.vmem [#allocation2], %s395_s27 }
  0x35   : > { %s157_s5 = sshll.u32 %s149_s18, 4  ;;  %p797_p13 = pnand %p450_p12, %p770_p6  ;;  %s793_s5 = int_to_ptr.vmem [resolvable:$true] %s157_s5 }
  0x36   : > { %s146_s7 = scalar_lea.sflag [#allocation3], %s145_s23  ;;  %s539_s8 = scalar_lea.hbm %s791_s4, 128 }
  0x37   : > { %p540_p0 = scmp.ne.s32.totalorder %s791_s4, %s539_s8  ;;  %p541_p3 = pneg %p797_p13 }
  0x38   : > { %s544_s24 = scalar_lea.hbm %s898_s0, 256  ;;  %p545_p9 = scmp.lt.u32.totalorder %s791_s4, %s898_s0 }
  0x39   : > { %p542_p5 = pnand %p541_p3, %p540_p0  ;;  %p546_p1 = scmp.lt.u32.totalorder %s544_s24, %s539_s8 }
  0x3a   : > { %p548_p4 = scmp.lt.u32.totalorder %s539_s8, %s791_s4 }
  0x3b   : > { %p543_p7 = pneg %p542_p5  ;;  %p547_p2 = por %p546_p1, %p545_p9 }
  0x3d   : > { %p549_p6 = por %p548_p4, %p547_p2 }
  0x3f   : > { %p550_p8 = pnand %p549_p6, %p543_p7 }
  0x41   : > { %553 = shalt.err (!%p550_p8)
}
  0x42   : > { %s554_s23 = scalar_lea.vmem %s793_s5, 128  ;;  %s660_s29 = smov [#allocation2]  }
  0x43   : > { %p555_p12 = scmp.ne.s32.totalorder %s793_s5, %s554_s23  ;;  %s559_s30 = sshll.u32 %s660_s29, 4  ;;  %s560_s30 = int_to_ptr.vmem [resolvable:$false] %s559_s30 }
  0x44   : > { %s561_s3 = scalar_lea.vmem %s560_s30, 256  ;;  %p562_p5 = scmp.lt.s32.totalorder %s793_s5, %s560_s30 }
  0x45   : > { %p557_p11 = pnand %p555_p12, %p541_p3  ;;  %p563_p9 = scmp.lt.s32.totalorder %s561_s3, %s554_s23 }
  0x47   : > { %p558_p0 = pneg %p557_p11  ;;  %p564_p1 = por %p563_p9, %p562_p5 }
  0x49   : > { %p565_p2 = pnand %p564_p1, %p558_p0 }
  0x4b   : > { %568 = shalt.err (!%p565_p2)
}
  0x4c   : > { %444 = dma.hbm_to_vmem [thread:$0]  (!%p797_p13), %s791_s4, 128, %s793_s5, %s146_s7  }
  0x4d   : > { %p915_p7 = scmp.ne.s32.totalorder %s909_s21, 0 }
  0x4e   : > { %s829_s18 = sand.u32 (!%p915_p7), 1, %s639_s10   ;;  %p916_p3 = scmp.ne.s32.totalorder (!%p915_p7), %s907_s19, 0 }
  0x4f   : > { %166 = sbr.rel (%p915_p7) target bundleno = 355 (0x163), region = 28  ;;  %s398_s8 = sshll.u32 (!%p915_p7), %s829_s18, 3 }
  0x50   : > { %s169_s15 = scalar_lea.sflag (!%p915_p7), [#allocation3], %s829_s18  ;;  %s172_s16 = scalar_lea.vmem (!%p915_p7), [#allocation2], %s398_s8 }
  0x56   : > { %622 = dma.done.wait (%p916_p3), %s169_s15, 128  }
  0x57   : > { %624 = vsyncadd (%p916_p3), %s169_s15, 4294967168  ;;  %p917_p13 = scmp.ne.s32.totalorder %s905_s17, 0 }
  0x59   : > { %626 = dma.done.wait (%p917_p13), [#allocation6], 512  }
  0x5a   : > { %628 = vsyncadd (%p917_p13), [#allocation6], 4294966784  ;;  %v661_v0 = vmov 0.0|0.0   ;;  %vm662_vm0 = vmmov 0   ;;  %v663_v1 = vmov 0.0   ;;  %v199_v2 = vld [vmem:[#allocation5] sm:$0xff] }
  0x5b   : > { %423 = vmatprep.subr.bf16.mxu0 %v661_v0  ;;  %420 = vmatprep.mubr.msk.f32.mxu0 %vm662_vm0, %v663_v1  ;;  %v200_v3 = vld [vmem:[#allocation5 + $0x8] sm:$0xff]  ;;  %v201_v4 = vld [vmem:[#allocation5 + $0x10] sm:$0xff]  ;;  %v202_v6 = vld [vmem:[#allocation5 + $0x18] sm:$0xff]  ;;  %vm203_vm1 = vcmask 261120   ;;  %s404_s17 = sshll.u32 %s647_s12, 7  ;;  %s196_s19 = scalar_lea.vmem [#allocation7], %s398_s8 }
  0x5c   : > { %v424_v5 = vpack.c.bf16 %v200_v3, %v199_v2  ;;  %v427_v7 = vpack.c.bf16 %v202_v6, %v201_v4  ;;  %v198_v8 = vld [vmem:[%s172_s16] sm:$0xff]  ;;  %s299_s21 = sshll.u32 %s196_s19, 4  ;;  %s849_s6 = scalar_lea.hbm %s900_s2, %s404_s17  ;;  %s851_s21 = int_to_ptr.vmem [resolvable:$true] %s299_s21 }
  0x5d   : > { %s286_s7 = scalar_lea.sflag [#allocation4], %s829_s18  ;;  %s569_s24 = scalar_lea.vmem %s851_s21, 128 }
  0x5e   : > { %425 = vmatpush3.bf16.msra.mxu0 %v424_v5  ;;  %p570_p4 = scmp.ne.s32.totalorder %s851_s21, %s569_s24  ;;  %s664_s12 = smov [#allocation7]  }
  0x5f   : > { %426 = vmatprep.subr.bf16.mxu0 %v661_v0  ;;  %s573_s22 = sshll.u32 %s664_s12, 4  ;;  %s574_s22 = int_to_ptr.vmem [resolvable:$false] %s573_s22 }
  0x60   : > { %p571_p6 = pnand %p570_p4, %p776_p10  ;;  %s575_s27 = scalar_lea.vmem %s574_s22, 256 }
  0x61   : > { %p576_p12 = scmp.lt.s32.totalorder %s851_s21, %s574_s22  ;;  %p577_p11 = scmp.lt.s32.totalorder %s575_s27, %s569_s24 }
  0x62   : > { %428 = vmatpush3.bf16.msra.mxu0 %v427_v7  ;;  %p572_p8 = pneg %p571_p6 }
  0x63   : > { %p578_p0 = por %p577_p11, %p576_p12 }
  0x65   : > { %421 = vmatmul.mubr.msk.f32.vlgmr.msra.gmra.mrb[0].mxu0 %vm203_vm1, %v198_v8  ;;  %p579_p5 = pnand %p578_p0, %p572_p8 }
 0x138   : > { %v273_v9 = vpop.f32.mrb[0].mxu0 }
 0x139   : > { %v402_v10 = vmul.f32 -1.442695, %v273_v9  ;;  %v422_v11 = vpop.f32.mrb[1].mxu0 }
 0x13b   : > { %507 = vpow2.f32 %v402_v10 }
 0x145   : > { %v508_v12 = vpop.eup %507 }
 0x146   : > { %v280_v13 = vadd.f32 1.0, %v508_v12 }
 0x148   : > { %509 = vrcp.f32 %v280_v13 }
 0x152   : > { %v510_v14 = vpop.eup %509 }
 0x153   : > { %v283_v15 = vmul.f32 %v510_v14, %v273_v9 }
 0x155   : > { %284 = vst [vmem:[%s196_s19] sm:$0xff] %v283_v15 }
 0x156   : > { %582 = shalt.err (!%p579_p5)
}
 0x157   : > { %s583_s23 = scalar_lea.hbm %s849_s6, 128  ;;  %s587_s3 = scalar_lea.hbm %s900_s2, 256 }
 0x158   : > { %p584_p9 = scmp.ne.s32.totalorder %s849_s6, %s583_s23  ;;  %p588_p7 = scmp.lt.u32.totalorder %s849_s6, %s900_s2 }
 0x159   : > { %p589_p3 = scmp.lt.u32.totalorder %s587_s3, %s583_s23  ;;  %p591_p4 = scmp.lt.u32.totalorder %s583_s23, %s849_s6 }
 0x15a   : > { %p585_p1 = pnand %p584_p9, %p776_p10 }
 0x15b   : > { %p590_p13 = por %p589_p3, %p588_p7 }
 0x15c   : > { %p586_p2 = pneg %p585_p1 }
 0x15d   : > { %p592_p6 = por %p591_p4, %p590_p13 }
 0x15f   : > { %p593_p8 = pnand %p592_p6, %p586_p2 }
 0x161   : > { %596 = shalt.err (!%p593_p8)
}
 0x162   : > { %435 = dma.vmem_to_hbm [thread:$0]  (%p776_p10), %s851_s21, 128, %s849_s6, %s286_s7  }
 0x163 PF: > { %s311_s15 = sand.u32 1, %s635_s9   ;;  %p918_p12 = scmp.ne.s32.totalorder %s908_s20, 0 }
 0x164   : > { %p919_p11 = scmp.ge.s32.totalorder %s655_s14, 2  ;;  %s312_s16 = scalar_lea.sflag [#allocation4], %s311_s15 }
 0x166   : > { %p446_p0 = pnand %p919_p11, %p918_p12 }
 0x168   : > { %630 = dma.done.wait (!%p446_p0), %s312_s16, 128  }
 0x169   : > { %632 = vsyncadd (!%p446_p0), %s312_s16, 4294967168  ;;  %s19_s14 = sadd.s32 1, %s655_s14   ;;  %s920_s9 = smov %s639_s10 }
 0x16a   : > { %p16_p5 = scmp.ge.s32.totalorder %s19_s14, 4   ;;  %s921_s10 = smov %s643_s11 }
 0x16b   : > { %s922_s11 = smov %s785_s28  ;;  %s923_s12 = smov %s651_s13 }
 0x16c   : > { %s924_s13 = smov %s926_s25  ;;  %18 = sbr.rel (!%p16_p5) target bundleno = 7 (0x7), region = 78 }
 0x173   :  { %317 = vsyncpa [#allocation3], 1 }
 0x174   :  { %319 = vsyncpa [#allocation3 + $0x1], 1 }
 0x175   :  { %320 = vsyncpa [#allocation6], 1 }
 0x176   :  { %321 = vsyncpa [#allocation4], 1 }
 0x177   :  { %323 = vsyncpa [#allocation4 + $0x1], 1 }

</bundles_post_ra>
